<compile_context>
chip_gen: v7x
topology: tpu7x:2x2x1
jax: 0.10.0
libtpu: 0.0.40
codegen_flags: <defaults>
</compile_context>

<pallas_src>
import jax
import jax.numpy as jnp
from jax import lax
from jax.experimental import pallas as pl
from jax.experimental.pallas import tpu as pltpu

HIDDEN = 32
EXPANSION = 2
EPS_BN = 1e-5   # torch.nn.BatchNorm1d default eps
EPS_LN = 1e-5   # torch.nn.LayerNorm default eps


def _cdiv(a, b):
    return (a + b - 1) // b


def _round_up(a, b):
    return _cdiv(a, b) * b


def _prob_block_kernel(x_ref, w1_ref, w2_ref, b1_ref, b2_ref, avg_ref,
                       q2_ref, q1_ref, c_ref, out_ref):
    """One (TMp, L) packed-row tile -> (TMp, pack) squared-L2 outputs.

    L = pack*H lanes carry `pack` logical rows side by side; all weight /
    reduction matrices are block-diagonal per 32-lane segment so rows never mix.
    """
    pack = out_ref.shape[1]

    # ff: Linear(H,He) -> ReLU -> Linear(He,H), lane-packed via block-diagonal
    # weights.  bf16 MXU operands, f32 accumulation; norm1 already folded in.
    x = x_ref[...].astype(jnp.bfloat16)                                 # (TMp, L)
    h = jnp.dot(x, w1_ref[...], preferred_element_type=jnp.float32)
    h = jnp.maximum(h + b1_ref[...], 0.0)
    ff = jnp.dot(h.astype(jnp.bfloat16), w2_ref[...],
                 preferred_element_type=jnp.float32) + b2_ref[...]      # (TMp, L)

    # LayerNorm mean per 32-lane segment (broadcast within the segment) via one
    # f32 MXU contraction against the block-diagonal averaging matrix.
    mu = jnp.dot(ff, avg_ref[...], preferred_element_type=jnp.float32)
    d = ff - mu
    dd = d * d

    # Folded LN-affine + prob-head BN + squared-L2 tail:
    #   sum_h (d*r*s + t)^2 = r^2*sum(s^2 d^2) + 2r*sum(s t d) + sum(t^2)
    # with r = rsqrt(var + eps) per (row, segment).  Per-segment sums are two
    # lane contractions against precomputed matrices (MXU slot, not VALU).
    q2 = jnp.dot(dd, q2_ref[...], preferred_element_type=jnp.float32)   # (TMp, 2p)
    a1 = jnp.dot(d, q1_ref[...], preferred_element_type=jnp.float32)    # (TMp, p)
    var = q2[:, :pack]
    a2 = q2[:, pack:]
    r = lax.rsqrt(var + EPS_LN)

    # dropout2: identity in eval mode.
    out_ref[...] = a2 * (r * r) + 2.0 * (a1 * r) + c_ref[...]


def prob_objectness_head_block(x, params, *, tile_m=2048):
    """x: (B, N, H) float32.  Returns (B, N) float32 (eval-mode forward).

    tile_m: logical rows per grid step (~tile_m*H*4 bytes of x DMA per step;
    2048 rows == 256 KiB at H=32).  The tile is capped so the grid keeps >= 2
    steps where possible, so both v7x TensorCores get work via the parallel axis.
    """
    B, N, H = x.shape
    He = H * EXPANSION
    M = B * N
    f32 = jnp.float32

    (rm1, rv1, g1, b1, w1, wb1, w2, wb2, g2, b2, rm3, rv3) = params

    # ---- fold eval-mode BatchNorm1d (norm1) into the first Linear ----
    inv1 = lax.rsqrt(rv1 + EPS_BN)                    # (1, H)
    a1 = g1 * inv1
    c1 = b1 - rm1 * a1
    w1f = w1 * a1.reshape(H, 1)                       # (H, He)
    wb1f = wb1 + c1 @ w1                              # (1, He)

    # ---- fuse LayerNorm affine with the affine-free prob-head BatchNorm ----
    inv3 = lax.rsqrt(rv3 + EPS_BN)                    # (1, H)
    s3 = (g2 * inv3)[0]                               # (H,)
    t3 = ((b2 - rm3) * inv3)[0]                       # (H,)

    # ---- lane packing: `pack` logical rows side by side on the 128 lanes ----
    pack = max(1, 128 // H)
    while pack > 1 and M % pack:
        pack //= 2
    L = pack * H
    Mp = M // pack

    eye_p = jnp.eye(pack, dtype=f32)
    w1_bd = jnp.kron(eye_p, w1f).astype(jnp.bfloat16)            # (L, pack*He)
    w2_bd = jnp.kron(eye_p, w2).astype(jnp.bfloat16)             # (pack*He, L)
    b1_bd = jnp.tile(wb1f, (1, pack)).astype(f32)                # (1, pack*He)
    b2_bd = jnp.tile(wb2, (1, pack)).astype(f32)                 # (1, L)

    # Segment-mean broadcast matrix and folded-tail contraction matrices,
    # all block-diagonal per H-lane segment.
    a_avg = jnp.kron(eye_p, jnp.full((H, H), 1.0 / H, f32))      # (L, L)
    seg_ind = jnp.kron(eye_p, jnp.ones((H, 1), f32))             # (L, pack)
    s3_t = jnp.tile(s3, pack)                                    # (L,)
    t3_t = jnp.tile(t3, pack)                                    # (L,)
    q2 = jnp.concatenate(
        [seg_ind * (1.0 / H),                                    # -> biased LN var
         seg_ind * (s3_t * s3_t)[:, None]],                      # -> sum(s^2 d^2)
        axis=1)                                                  # (L, 2*pack)
    q1 = seg_ind * (s3_t * t3_t)[:, None]                        # (L, pack)
    c_tt = jnp.full((1, pack), jnp.sum(t3 * t3), f32)            # sum(t^2)

    # ---- tile / grid sizing: no jnp.pad; ragged last block handled by Pallas ----
    x2 = x.reshape(Mp, L)                 # contiguous reshape -> no data movement
    tmp = max(1, min(tile_m // pack, Mp))
    if Mp > 8:
        tmp = min(tmp, _round_up(_cdiv(Mp, 2), 8))   # keep >= 2 steps (v7x megacore)
        tmp = max(8, (tmp // 8) * 8)                 # sublane-aligned tile
    grid = _cdiv(Mp, tmp)

    out = pl.pallas_call(
        _prob_block_kernel,
        out_shape=jax.ShapeDtypeStruct((Mp, pack), f32),
        grid_spec=pltpu.PrefetchScalarGridSpec(
            num_scalar_prefetch=0,
            grid=(grid,),
            in_specs=[
                pl.BlockSpec((tmp, L), lambda i: (i, 0)),          # x row tile
                pl.BlockSpec((L, pack * He), lambda i: (0, 0)),    # block-diag W1 (bf16)
                pl.BlockSpec((pack * He, L), lambda i: (0, 0)),    # block-diag W2 (bf16)
                pl.BlockSpec((1, pack * He), lambda i: (0, 0)),    # folded bias 1
                pl.BlockSpec((1, L), lambda i: (0, 0)),            # bias 2
                pl.BlockSpec((L, L), lambda i: (0, 0)),            # segment-avg matrix
                pl.BlockSpec((L, 2 * pack), lambda i: (0, 0)),     # [var | s^2] columns
                pl.BlockSpec((L, pack), lambda i: (0, 0)),         # s*t columns
                pl.BlockSpec((1, pack), lambda i: (0, 0)),         # sum(t^2)
            ],
            out_specs=pl.BlockSpec((tmp, pack), lambda i: (i, 0)),
        ),
        compiler_params=pltpu.CompilerParams(
            dimension_semantics=("parallel",),
            vmem_limit_bytes=32 * 1024 * 1024),
    )(x2, w1_bd, w2_bd, b1_bd, b2_bd, a_avg, q2, q1, c_tt)

    # (Mp, pack) row-major flatten restores original row order: r = p*pack + j.
    return out.reshape(B, N)


def init_params(key, hidden_dim=HIDDEN, expansion=EXPANSION):
    H, He = hidden_dim, hidden_dim * expansion
    ks = jax.random.split(key, 10)
    # norm1 (BatchNorm1d, affine=True): running stats + gamma/beta
    rm1 = 0.1 * jax.random.normal(ks[0], (1, H), jnp.float32)
    rv1 = jax.random.uniform(ks[1], (1, H), jnp.float32, 0.5, 1.5)
    g1 = jnp.ones((1, H), jnp.float32) + 0.05 * jax.random.normal(ks[2], (1, H))
    b1 = 0.05 * jax.random.normal(ks[3], (1, H), jnp.float32)
    # ff: Linear(H, He) -> ReLU -> Linear(He, H); weights stored as (in, out)
    w1 = (1.0 / jnp.sqrt(H)) * jax.random.normal(ks[4], (H, He), jnp.float32)
    wb1 = 0.05 * jax.random.normal(ks[5], (1, He), jnp.float32)
    w2 = (1.0 / jnp.sqrt(He)) * jax.random.normal(ks[6], (He, H), jnp.float32)
    wb2 = 0.05 * jax.random.normal(ks[7], (1, H), jnp.float32)
    # norm2 (LayerNorm)
    g2 = jnp.ones((1, H), jnp.float32)
    b2 = jnp.zeros((1, H), jnp.float32)
    # prob_head BatchNorm1d (affine=False): running stats only
    rm3 = 0.1 * jax.random.normal(ks[8], (1, H), jnp.float32)
    rv3 = jax.random.uniform(ks[9], (1, H), jnp.float32, 0.5, 1.5)
    return (rm1, rv1, g1, b1, w1, wb1, w2, wb2, g2, b2, rm3, rv3)


def _reference(x, params):
    """Pure-JAX eval-mode reference (f32 throughout)."""
    (rm1, rv1, g1, b1, w1, wb1, w2, wb2, g2, b2, rm3, rv3) = params
    B, N, H = x.shape
    o = x.reshape(B * N, H)
    o = (o - rm1) * lax.rsqrt(rv1 + EPS_BN) * g1 + b1
    h = jnp.maximum(o @ w1 + wb1, 0.0)
    ff = h @ w2 + wb2
    mu = jnp.mean(ff, axis=-1, keepdims=True)
    var = jnp.mean((ff - mu) ** 2, axis=-1, keepdims=True)
    ln = (ff - mu) * lax.rsqrt(var + EPS_LN) * g2 + b2
    z = (ln - rm3) * lax.rsqrt(rv3 + EPS_BN)
    return jnp.sum(z * z, axis=-1).reshape(B, N)


if __name__ == "__main__":
    key = jax.random.PRNGKey(0)
    k_x, k_p = jax.random.split(key)

    B, N, H = 2, 8, HIDDEN
    x = jax.random.normal(k_x, (B, N, H), jnp.float32)
    params = init_params(k_p, H, EXPANSION)

    prob = prob_objectness_head_block(x, params)
    prob = jax.block_until_ready(prob)
    assert prob.shape == (B, N), prob.shape
    assert bool(jnp.all(jnp.isfinite(prob)))

    # Loose tolerance: the kernel uses bf16 MXU operands (f32 accumulate).
    ref = _reference(x, params)
    assert bool(jnp.allclose(prob, ref, rtol=1e-1, atol=5e-1)), (
        float(jnp.max(jnp.abs(prob - ref))))

    print("KERNEL_OK")
</pallas_src>

<mosaic_0001>
module attributes {stable_mosaic.version = 11 : i64} {
  func.func @_prob_block_kernel(%arg0: i32, %arg1: memref<4x128xf32, #tpu.memory_space<vmem>>, %arg2: memref<128x256xbf16, #tpu.memory_space<vmem>>, %arg3: memref<256x128xbf16, #tpu.memory_space<vmem>>, %arg4: memref<1x256xf32, #tpu.memory_space<vmem>>, %arg5: memref<1x128xf32, #tpu.memory_space<vmem>>, %arg6: memref<128x128xf32, #tpu.memory_space<vmem>>, %arg7: memref<128x8xf32, #tpu.memory_space<vmem>>, %arg8: memref<128x4xf32, #tpu.memory_space<vmem>>, %arg9: memref<1x4xf32, #tpu.memory_space<vmem>>, %arg10: memref<4x4xf32, #tpu.memory_space<vmem>>) attributes {dimension_semantics = [#tpu.dimension_semantics<parallel>], iteration_bounds = array<i64: 1>, scalar_prefetch = 0 : i64, scratch_operands = 0 : i64, tpu.core_type = #tpu.core_type<tc>, window_params = [{transform_indices = @transform_0, window_bounds = array<i64: 4, 128>}, {pipeline_mode = #tpu.pipeline_mode<synchronous>, transform_indices = @transform_1, window_bounds = array<i64: 128, 256>}, {pipeline_mode = #tpu.pipeline_mode<synchronous>, transform_indices = @transform_2, window_bounds = array<i64: 256, 128>}, {pipeline_mode = #tpu.pipeline_mode<synchronous>, transform_indices = @transform_3, window_bounds = array<i64: 1, 256>}, {pipeline_mode = #tpu.pipeline_mode<synchronous>, transform_indices = @transform_4, window_bounds = array<i64: 1, 128>}, {pipeline_mode = #tpu.pipeline_mode<synchronous>, transform_indices = @transform_5, window_bounds = array<i64: 128, 128>}, {pipeline_mode = #tpu.pipeline_mode<synchronous>, transform_indices = @transform_6, window_bounds = array<i64: 128, 8>}, {pipeline_mode = #tpu.pipeline_mode<synchronous>, transform_indices = @transform_7, window_bounds = array<i64: 128, 4>}, {pipeline_mode = #tpu.pipeline_mode<synchronous>, transform_indices = @transform_8, window_bounds = array<i64: 1, 4>}, {transform_indices = @transform_9, window_bounds = array<i64: 4, 4>}]} {
    %c0 = arith.constant 0 : index
    %c0_0 = arith.constant 0 : index
    %0 = vector.load %arg1[%c0, %c0_0] : memref<4x128xf32, #tpu.memory_space<vmem>>, vector<4x128xf32>
    %1 = arith.truncf %0 : vector<4x128xf32> to vector<4x128xbf16>
    %c0_1 = arith.constant 0 : index
    %c0_2 = arith.constant 0 : index
    %2 = vector.load %arg2[%c0_1, %c0_2] : memref<128x256xbf16, #tpu.memory_space<vmem>>, vector<128x256xbf16>
    %cst = arith.constant dense<0.000000e+00> : vector<4x256xf32>
    %3 = tpu.matmul %1, %2, %cst {dimension_numbers = #tpu.dot_dimension_numbers<[1], [0], [0], [1], [0, 0, 1, 1], [], []>} : vector<4x128xbf16>, vector<128x256xbf16>, vector<4x256xf32> -> vector<4x256xf32>
    %c0_3 = arith.constant 0 : index
    %c0_4 = arith.constant 0 : index
    %4 = vector.load %arg4[%c0_3, %c0_4] : memref<1x256xf32, #tpu.memory_space<vmem>>, vector<1x256xf32>
    %5 = vector.broadcast %4 : vector<1x256xf32> to vector<4x256xf32>
    %6 = arith.addf %3, %5 : vector<4x256xf32>
    %cst_5 = arith.constant 0.000000e+00 : f32
    %7 = vector.broadcast %cst_5 : f32 to vector<4x256xf32>
    %8 = arith.maximumf %6, %7 : vector<4x256xf32>
    %9 = arith.truncf %8 : vector<4x256xf32> to vector<4x256xbf16>
    %c0_6 = arith.constant 0 : index
    %c0_7 = arith.constant 0 : index
    %10 = vector.load %arg3[%c0_6, %c0_7] : memref<256x128xbf16, #tpu.memory_space<vmem>>, vector<256x128xbf16>
    %cst_8 = arith.constant dense<0.000000e+00> : vector<4x128xf32>
    %11 = tpu.matmul %9, %10, %cst_8 {dimension_numbers = #tpu.dot_dimension_numbers<[1], [0], [0], [1], [0, 0, 1, 1], [], []>} : vector<4x256xbf16>, vector<256x128xbf16>, vector<4x128xf32> -> vector<4x128xf32>
    %c0_9 = arith.constant 0 : index
    %c0_10 = arith.constant 0 : index
    %12 = vector.load %arg5[%c0_9, %c0_10] : memref<1x128xf32, #tpu.memory_space<vmem>>, vector<1x128xf32>
    %13 = vector.broadcast %12 : vector<1x128xf32> to vector<4x128xf32>
    %14 = arith.addf %11, %13 : vector<4x128xf32>
    %c0_11 = arith.constant 0 : index
    %c0_12 = arith.constant 0 : index
    %15 = vector.load %arg6[%c0_11, %c0_12] : memref<128x128xf32, #tpu.memory_space<vmem>>, vector<128x128xf32>
    %cst_13 = arith.constant dense<0.000000e+00> : vector<4x128xf32>
    %16 = tpu.matmul %14, %15, %cst_13 {dimension_numbers = #tpu.dot_dimension_numbers<[1], [0], [0], [1], [0, 0, 1, 1], [], []>} : vector<4x128xf32>, vector<128x128xf32>, vector<4x128xf32> -> vector<4x128xf32>
    %17 = arith.subf %14, %16 : vector<4x128xf32>
    %18 = arith.mulf %17, %17 : vector<4x128xf32>
    %c0_14 = arith.constant 0 : index
    %c0_15 = arith.constant 0 : index
    %19 = vector.load %arg7[%c0_14, %c0_15] : memref<128x8xf32, #tpu.memory_space<vmem>>, vector<128x8xf32>
    %cst_16 = arith.constant dense<0.000000e+00> : vector<4x8xf32>
    %20 = tpu.matmul %18, %19, %cst_16 {dimension_numbers = #tpu.dot_dimension_numbers<[1], [0], [0], [1], [0, 0, 1, 1], [], []>} : vector<4x128xf32>, vector<128x8xf32>, vector<4x8xf32> -> vector<4x8xf32>
    %c0_17 = arith.constant 0 : index
    %c0_18 = arith.constant 0 : index
    %21 = vector.load %arg8[%c0_17, %c0_18] : memref<128x4xf32, #tpu.memory_space<vmem>>, vector<128x4xf32>
    %cst_19 = arith.constant dense<0.000000e+00> : vector<4x4xf32>
    %22 = tpu.matmul %17, %21, %cst_19 {dimension_numbers = #tpu.dot_dimension_numbers<[1], [0], [0], [1], [0, 0, 1, 1], [], []>} : vector<4x128xf32>, vector<128x4xf32>, vector<4x4xf32> -> vector<4x4xf32>
    %23 = vector.extract_strided_slice %20 {offsets = [0, 0], sizes = [4, 4], strides = [1, 1]} : vector<4x8xf32> to vector<4x4xf32>
    %24 = vector.extract_strided_slice %20 {offsets = [0, 4], sizes = [4, 4], strides = [1, 1]} : vector<4x8xf32> to vector<4x4xf32>
    %cst_20 = arith.constant 9.99999974E-6 : f32
    %25 = vector.broadcast %cst_20 : f32 to vector<4x4xf32>
    %26 = arith.addf %23, %25 : vector<4x4xf32>
    %27 = math.rsqrt %26 : vector<4x4xf32>
    %28 = arith.mulf %27, %27 : vector<4x4xf32>
    %29 = arith.mulf %24, %28 : vector<4x4xf32>
    %30 = arith.mulf %22, %27 : vector<4x4xf32>
    %cst_21 = arith.constant 2.000000e+00 : f32
    %31 = vector.broadcast %cst_21 : f32 to vector<4x4xf32>
    %32 = arith.mulf %31, %30 : vector<4x4xf32>
    %33 = arith.addf %29, %32 : vector<4x4xf32>
    %c0_22 = arith.constant 0 : index
    %c0_23 = arith.constant 0 : index
    %34 = vector.load %arg9[%c0_22, %c0_23] : memref<1x4xf32, #tpu.memory_space<vmem>>, vector<1x4xf32>
    %35 = vector.broadcast %34 : vector<1x4xf32> to vector<4x4xf32>
    %36 = arith.addf %33, %35 : vector<4x4xf32>
    %c0_24 = arith.constant 0 : index
    %c0_25 = arith.constant 0 : index
    %37 = vector.load %arg10[%c0_24, %c0_25] : memref<4x4xf32, #tpu.memory_space<vmem>>, vector<4x4xf32>
    tpu.vector_store %arg10[%c0_24, %c0_25], %36 {strides = array<i32>} : memref<4x4xf32, #tpu.memory_space<vmem>>, vector<4x4xf32>,
    return
  }
  func.func @transform_0(%arg0: i32) -> (i32, i32) {
    %c0_i32 = arith.constant 0 : i32
    %c0_i32_0 = arith.constant 0 : i32
    return %arg0, %c0_i32 : i32, i32
  }
  func.func @transform_1(%arg0: i32) -> (i32, i32) {
    %c0_i32 = arith.constant 0 : i32
    %c0_i32_0 = arith.constant 0 : i32
    %c0_i32_1 = arith.constant 0 : i32
    return %c0_i32, %c0_i32_0 : i32, i32
  }
  func.func @transform_2(%arg0: i32) -> (i32, i32) {
    %c0_i32 = arith.constant 0 : i32
    %c0_i32_0 = arith.constant 0 : i32
    %c0_i32_1 = arith.constant 0 : i32
    return %c0_i32, %c0_i32_0 : i32, i32
  }
  func.func @transform_3(%arg0: i32) -> (i32, i32) {
    %c0_i32 = arith.constant 0 : i32
    %c0_i32_0 = arith.constant 0 : i32
    %c0_i32_1 = arith.constant 0 : i32
    return %c0_i32, %c0_i32_0 : i32, i32
  }
  func.func @transform_4(%arg0: i32) -> (i32, i32) {
    %c0_i32 = arith.constant 0 : i32
    %c0_i32_0 = arith.constant 0 : i32
    %c0_i32_1 = arith.constant 0 : i32
    return %c0_i32, %c0_i32_0 : i32, i32
  }
  func.func @transform_5(%arg0: i32) -> (i32, i32) {
    %c0_i32 = arith.constant 0 : i32
    %c0_i32_0 = arith.constant 0 : i32
    %c0_i32_1 = arith.constant 0 : i32
    return %c0_i32, %c0_i32_0 : i32, i32
  }
  func.func @transform_6(%arg0: i32) -> (i32, i32) {
    %c0_i32 = arith.constant 0 : i32
    %c0_i32_0 = arith.constant 0 : i32
    %c0_i32_1 = arith.constant 0 : i32
    return %c0_i32, %c0_i32_0 : i32, i32
  }
  func.func @transform_7(%arg0: i32) -> (i32, i32) {
    %c0_i32 = arith.constant 0 : i32
    %c0_i32_0 = arith.constant 0 : i32
    %c0_i32_1 = arith.constant 0 : i32
    return %c0_i32, %c0_i32_0 : i32, i32
  }
  func.func @transform_8(%arg0: i32) -> (i32, i32) {
    %c0_i32 = arith.constant 0 : i32
    %c0_i32_0 = arith.constant 0 : i32
    %c0_i32_1 = arith.constant 0 : i32
    return %c0_i32, %c0_i32_0 : i32, i32
  }
  func.func @transform_9(%arg0: i32) -> (i32, i32) {
    %c0_i32 = arith.constant 0 : i32
    %c0_i32_0 = arith.constant 0 : i32
    return %arg0, %c0_i32 : i32, i32
  }
}

</mosaic_0001>

<bundles_post_ra>
// kernel: tpu_custom_call.1
= control target key start
LH: loop header
LB: loop body
LE: loop exit
PB: predicated region body
PF: predicated region fallthrough
CT: control target
= control target key end

     0   :  { %14 = vsyncpa [#allocation3], 0  ;;  %s1383_s0 = inlined_call_operand.vmem [shape: f32[4,128], index: 0, kind: input, shape index: {}]   ;;  %s1384_s1 = inlined_call_operand.vmem [shape: bf16[128,256], index: 1, kind: input, shape index: {}]   ;;  %s1385_s2 = inlined_call_operand.vmem [shape: bf16[256,128], index: 2, kind: input, shape index: {}]   ;;  %s1386_s3 = inlined_call_operand.vmem [shape: f32[1,256], index: 3, kind: input, shape index: {}]   ;;  %s1387_s4 = inlined_call_operand.vmem [shape: f32[1,128], index: 4, kind: input, shape index: {}]   ;;  %s1388_s5 = inlined_call_operand.hbm [shape: f32[128,128], index: 5, kind: input, shape index: {}]   ;;  %s1389_s6 = inlined_call_operand.vmem [shape: f32[128,8], index: 6, kind: input, shape index: {}]   ;;  %s1390_s7 = inlined_call_operand.vmem [shape: f32[128,4], index: 7, kind: input, shape index: {}]   ;;  %s1391_s8 = inlined_call_operand.vmem [shape: f32[1,4], index: 8, kind: input, shape index: {}]   ;;  %s1392_s9 = inlined_call_operand.hbm [shape: f32[4,4], index: 9, kind: output, shape index: {}]  }
   0x1   :  { %15 = vsyncpa [#allocation4], 0  ;;  %s1068_s30 = smov [#allocation2]   ;;  %s1020_s13 = scalar_lea.hbm %s1388_s5, 2048 }
   0x2   :  { %s31_s10 = sshll.u32 %s1068_s30, 4  ;;  %p1021_p0 = scmp.ne.s32.totalorder %s1388_s5, %s1020_s13  ;;  %s32_s10 = int_to_ptr.vmem [resolvable:$true] %s31_s10 }
   0x3   :  { %p1024_p1 = scmp.lt.u32.totalorder %s1020_s13, %s1388_s5 }
   0x5   :  { %p1026_p2 = pnand %p1024_p1, %p1021_p0 }
   0x7   :  { %1029 = shalt.err (!%p1026_p2)
}
   0x8   :  { %s1030_s18 = scalar_lea.vmem %s32_s10, 2048  ;;  %p1035_p4 = scmp.lt.s32.totalorder %s32_s10, %s32_s10 }
   0x9   :  { %p1031_p3 = scmp.ne.s32.totalorder %s32_s10, %s1030_s18  ;;  %p1036_p5 = scmp.lt.s32.totalorder %s1030_s18, %s1030_s18 }
   0xb   :  { %p1037_p6 = por %p1036_p5, %p1035_p4 }
   0xd   :  { %p1038_p7 = pnand %p1037_p6, %p1031_p3 }
   0xf   :  { %1041 = shalt.err (!%p1038_p7)
}
  0x10   :  { %s1069_s19 = smov 128   ;;  %s1070_s20 = smov 8  }
  0x11   :  { %37 = dma.hbm_to_vmem [thread:$0]  %s1388_s5, 2048, %s32_s10, [#allocation3], %s1069_s19, %s1069_s19, %s1070_s20  }
  0x12   :  { %1064 = dma.done.wait [#allocation3], 2048  }
  0x13   :  { %1065 = vsyncadd [#allocation3], 4294965248  ;;  %v1071_v0 = vmov 0   ;;  %v978_v1 = vld [vmem:[%s1384_s1 + $0x4] ss:$8 sps:$4 sm:$0xff]   ;;  %v1006_v15 = vld [vmem:[%s1385_s2 + $0x50] sm:$0xff]   ;;  %v68_v57 = vlaneseq }
  0x14   :  { %190 = vmatprep.mubr.bf16.mxu0 %v1071_v0  ;;  %v980_v2 = vld [vmem:[%s1384_s1] ss:$8 sps:$4 sm:$0xff]   ;;  %158 = vmatprep.subr.bf16.mxu0 %v978_v1  ;;  %v981_v3 = vld [vmem:[%s1384_s1 + $0x14] ss:$8 sps:$4 sm:$0xff]   ;;  %v983_v4 = vld [vmem:[%s1384_s1 + $0x10] ss:$8 sps:$4 sm:$0xff]  }
  0x15   :  { %159 = vmatpush1.bf16.msra.mxu0 %v980_v2  ;;  %v984_v5 = vld [vmem:[%s1384_s1 + $0x24] ss:$8 sps:$4 sm:$0xff]   ;;  %v986_v6 = vld [vmem:[%s1384_s1 + $0x20] ss:$8 sps:$4 sm:$0xff]   ;;  %v987_v7 = vld [vmem:[%s1384_s1 + $0x34] ss:$8 sps:$4 sm:$0xff]  }
  0x16   :  { %160 = vmatprep.subr.bf16.mxu0 %v981_v3  ;;  %v989_v8 = vld [vmem:[%s1384_s1 + $0x30] ss:$8 sps:$4 sm:$0xff]   ;;  %v990_v9 = vld [vmem:[%s1384_s1 + $0x44] ss:$8 sps:$4 sm:$0xff]   ;;  %v992_v12 = vld [vmem:[%s1384_s1 + $0x40] ss:$8 sps:$4 sm:$0xff]  }
  0x17   :  { %v1002_v10 = vld [vmem:[%s1385_s2 + $0x40] sm:$0xff]   ;;  %v1004_v13 = vld [vmem:[%s1385_s2 + $0x48] sm:$0xff]   ;;  %v993_v16 = vld [vmem:[%s1384_s1 + $0x54] ss:$8 sps:$4 sm:$0xff]   ;;  %v1072_v38 = vmov 0.0|0.0   ;;  %v69_v58 = vshrl.u32 %v68_v57, 7 }
  0x18   :  { %v1003_v11 = vld [vmem:[%s1385_s2] sm:$0xff]   ;;  %718 = vmatprep.subr.bf16.mxu1 %v1002_v10  ;;  %v1005_v14 = vld [vmem:[%s1385_s2 + $0x8] sm:$0xff]   ;;  %v995_v17 = vld [vmem:[%s1384_s1 + $0x50] ss:$8 sps:$4 sm:$0xff]   ;;  %vm1073_vm0 = vmmov 0   ;;  %s1075_s12 = smov 4  }
  0x19   :  { %161 = vmatpush1.bf16.msra.mxu0 %v983_v4  ;;  %719 = vmatpush3.bf16.msra.mxu1 %v1003_v11  ;;  %v1007_v18 = vld [vmem:[%s1385_s2 + $0x10] sm:$0xff]   ;;  %v1008_v19 = vld [vmem:[%s1385_s2 + $0x58] sm:$0xff]   ;;  %v996_v20 = vld [vmem:[%s1384_s1 + $0x64] ss:$8 sps:$4 sm:$0xff]   ;;  %v70_v59 = vsub.s32 0, %v69_v58  ;;  %v74_v61 = vsub.s32 1, %v69_v58 }
  0x1a   :  { %162 = vmatprep.subr.bf16.mxu0 %v984_v5  ;;  %720 = vmatprep.subr.bf16.mxu1 %v1004_v13  ;;  %v998_v21 = vld [vmem:[%s1384_s1 + $0x60] ss:$8 sps:$4 sm:$0xff]   ;;  %v999_v22 = vld [vmem:[%s1384_s1 + $0x74] ss:$8 sps:$4 sm:$0xff]   ;;  %v1001_v26 = vld [vmem:[%s1384_s1 + $0x70] ss:$8 sps:$4 sm:$0xff]  }
  0x1b   :  { %v1009_v23 = vld [vmem:[%s1385_s2 + $0x18] sm:$0xff]   ;;  %v1010_v24 = vld [vmem:[%s1385_s2 + $0x60] sm:$0xff]   ;;  %v1012_v28 = vld [vmem:[%s1385_s2 + $0x68] sm:$0xff]   ;;  %v1074_v13 = vmov 0.0   ;;  %vm667_vm1 = vcmask 27648  }
  0x1c   :  { %v1011_v25 = vld [vmem:[%s1385_s2 + $0x20] sm:$0xff]   ;;  %v1013_v30 = vld [vmem:[%s1385_s2 + $0x28] sm:$0xff]   ;;  %v1014_v31 = vld [vmem:[%s1385_s2 + $0x70] sm:$0xff]  }
  0x1d   :  { %163 = vmatpush1.bf16.msra.mxu0 %v986_v6  ;;  %721 = vmatpush3.bf16.msra.mxu1 %v1005_v14  ;;  %v48_v27 = vld [vmem:[%s1383_s0] sm:$0xf]  ;;  %v1015_v32 = vld [vmem:[%s1385_s2 + $0x30] sm:$0xff]   ;;  %v1016_v33 = vld [vmem:[%s1385_s2 + $0x78] sm:$0xff]  }
  0x1e   :  { %164 = vmatprep.subr.bf16.mxu0 %v987_v7  ;;  %722 = vmatprep.subr.bf16.mxu1 %v1006_v15  ;;  %v49_v29 = vpack.c.bf16 %v48_v27, %v48_v27  ;;  %v1017_v34 = vld [vmem:[%s1385_s2 + $0x38] sm:$0xff]   ;;  %v378_v35 = vld [vmem:[#allocation2] sm:$0xff]  ;;  %v379_v36 = vld [vmem:[#allocation2 + $0x8] sm:$0xff] }
  0x1f   :  { %v380_v37 = vld [vmem:[#allocation2 + $0x10] sm:$0xff]  ;;  %v897_v39 = vpack.c.bf16 %v379_v36, %v378_v35  ;;  %v381_v40 = vld [vmem:[#allocation2 + $0x18] sm:$0xff]  ;;  %v382_v42 = vld [vmem:[#allocation2 + $0x20] sm:$0xff] }
  0x20   :  { %v900_v41 = vpack.c.bf16 %v381_v40, %v380_v37  ;;  %v383_v43 = vld [vmem:[#allocation2 + $0x28] sm:$0xff]  ;;  %v384_v45 = vld [vmem:[#allocation2 + $0x30] sm:$0xff]  ;;  %v385_v46 = vld [vmem:[#allocation2 + $0x38] sm:$0xff] }
  0x21   :  { %165 = vmatpush1.bf16.msra.mxu0 %v989_v8  ;;  %723 = vmatpush3.bf16.msra.mxu1 %v1007_v18  ;;  %v903_v44 = vpack.c.bf16 %v383_v43, %v382_v42  ;;  %v906_v47 = vpack.c.bf16 %v385_v46, %v384_v45  ;;  %v386_v48 = vld [vmem:[#allocation2 + $0x40] sm:$0xff]  ;;  %v387_v49 = vld [vmem:[#allocation2 + $0x48] sm:$0xff]  ;;  %v388_v51 = vld [vmem:[#allocation2 + $0x50] sm:$0xff] }
  0x22   :  { %166 = vmatprep.subr.bf16.mxu0 %v990_v9  ;;  %724 = vmatprep.subr.bf16.mxu1 %v1008_v19  ;;  %v909_v50 = vpack.c.bf16 %v387_v49, %v386_v48  ;;  %v389_v52 = vld [vmem:[#allocation2 + $0x58] sm:$0xff]  ;;  %v390_v54 = vld [vmem:[#allocation2 + $0x60] sm:$0xff]  ;;  %v391_v55 = vld [vmem:[#allocation2 + $0x68] sm:$0xff] }
  0x23   :  { %v912_v53 = vpack.c.bf16 %v389_v52, %v388_v51  ;;  %v915_v56 = vpack.c.bf16 %v391_v55, %v390_v54  ;;  %v66_v60 = vld [vmem:[%s1386_s3] sm:$0x3]  ;;  %v392_v10 = vld [vmem:[#allocation2 + $0x70] sm:$0xff]  ;;  %v393_v11 = vld [vmem:[#allocation2 + $0x78] sm:$0xff] }
  0x24   :  { %v71_v62 = vrot.slane %v66_v60, %v70_v59  ;;  %v75_v63 = vrot.slane %v66_v60, %v74_v61  ;;  %v466_v14 = vld [vmem:[%s1389_s6] sm:$0xff]  ;;  %v467_v15 = vld [vmem:[%s1389_s6 + $0x8] sm:$0xff]  ;;  %v469_v18 = vld [vmem:[%s1389_s6 + $0x18] sm:$0xff] }
  0x25   :  { %167 = vmatpush1.bf16.msra.mxu0 %v992_v12  ;;  %725 = vmatpush3.bf16.msra.mxu1 %v1009_v23  ;;  %v918_v12 = vpack.c.bf16 %v393_v11, %v392_v10  ;;  %v472_v23 = vld [vmem:[%s1389_s6 + $0x30] sm:$0xff]  ;;  %v475_v27 = vld [vmem:[%s1389_s6 + $0x48] sm:$0xff]  ;;  %v552_v36 = vld [vmem:[%s1390_s7] sm:$0xff] }
  0x26   :  { %168 = vmatprep.subr.bf16.mxu0 %v993_v16  ;;  %726 = vmatprep.subr.bf16.mxu1 %v1010_v24  ;;  %v921_v16 = vpack.c.bf16 %v467_v15, %v466_v14  ;;  %v473_v24 = vld [vmem:[%s1389_s6 + $0x38] sm:$0xff]  ;;  %v553_v37 = vld [vmem:[%s1390_s7 + $0x8] sm:$0xff]  ;;  %v554_v46 = vld [vmem:[%s1390_s7 + $0x10] sm:$0xff] }
  0x27   :  { %v556_v49 = vld [vmem:[%s1390_s7 + $0x20] sm:$0xff]  ;;  %v558_v52 = vld [vmem:[%s1390_s7 + $0x30] sm:$0xff]  ;;  %v563_v59 = vld [vmem:[%s1390_s7 + $0x58] sm:$0xff] }
  0x28   :  { %v560_v55 = vld [vmem:[%s1390_s7 + $0x40] sm:$0xff]  ;;  %v562_v58 = vld [vmem:[%s1390_s7 + $0x50] sm:$0xff] }
  0x29   :  { %169 = vmatpush1.bf16.msra.mxu0 %v995_v17  ;;  %727 = vmatpush3.bf16.msra.mxu1 %v1011_v25  ;;  %v468_v17 = vld [vmem:[%s1389_s6 + $0x10] sm:$0xff]  ;;  %v930_v25 = vpack.c.bf16 %v473_v24, %v472_v23  ;;  %v960_v60 = vpack.c.bf16 %v563_v59, %v562_v58  ;;  %v564_v61 = vld [vmem:[%s1390_s7 + $0x60] sm:$0xff] }
  0x2a   :  { %170 = vmatprep.subr.bf16.mxu0 %v996_v20  ;;  %728 = vmatprep.subr.bf16.mxu1 %v1012_v28  ;;  %v924_v19 = vpack.c.bf16 %v469_v18, %v468_v17  ;;  %v470_v20 = vld [vmem:[%s1389_s6 + $0x20] sm:$0xff] }
  0x2d   :  { %171 = vmatpush1.bf16.msra.mxu0 %v998_v21  ;;  %729 = vmatpush3.bf16.msra.mxu1 %v1013_v30  ;;  %v471_v21 = vld [vmem:[%s1389_s6 + $0x28] sm:$0xff]  ;;  %v477_v30 = vld [vmem:[%s1389_s6 + $0x58] sm:$0xff] }
  0x2e   :  { %172 = vmatprep.subr.bf16.mxu0 %v999_v22  ;;  %730 = vmatprep.subr.bf16.mxu1 %v1014_v31  ;;  %v927_v22 = vpack.c.bf16 %v471_v21, %v470_v20 }
  0x31   :  { %173 = vmatpush1.bf16.msra.mxu0 %v1001_v26  ;;  %731 = vmatpush3.bf16.msra.mxu1 %v1015_v32  ;;  %v474_v26 = vld [vmem:[%s1389_s6 + $0x40] sm:$0xff] }
  0x32   :  { %732 = vmatprep.subr.bf16.mxu1 %v1016_v33  ;;  %896 = vmatprep.subr.bf16.mxu0 %v1072_v38  ;;  %v933_v28 = vpack.c.bf16 %v475_v27, %v474_v26  ;;  %v478_v32 = vld [vmem:[%s1389_s6 + $0x60] sm:$0xff]  ;;  %v479_v33 = vld [vmem:[%s1389_s6 + $0x68] sm:$0xff] }
  0x34   :  { %191 = vmatmul.mubr.bf16.vlgmr.msra.gmra.mrb[0].mxu0 %v49_v29  ;;  %v476_v29 = vld [vmem:[%s1389_s6 + $0x50] sm:$0xff] }
  0x35   :  { %733 = vmatpush3.bf16.msra.mxu1 %v1017_v34  ;;  %898 = vmatpush3.bf16.msra.mxu0 %v897_v39  ;;  %v936_v31 = vpack.c.bf16 %v477_v30, %v476_v29  ;;  %v939_v34 = vpack.c.bf16 %v479_v33, %v478_v32  ;;  %v700_v39 = vld [vmem:[%s1387_s4] ss:$0 sm:$0xff] }
  0x36   :  { %920 = vmatprep.subr.bf16.mxu1 %v1072_v38  ;;  %899 = vmatprep.subr.bf16.mxu0 %v1072_v38 }
  0x37   :  { %823 = vmatprep.mubr.msk.f32.mxu0 %vm1073_vm0, %v1074_v13 }
  0x39   :  { %901 = vmatpush3.bf16.msra.mxu0 %v900_v41 }
  0x3a   :  { %902 = vmatprep.subr.bf16.mxu0 %v1072_v38 }
  0x3d   :  { %904 = vmatpush3.bf16.msra.mxu0 %v903_v44  ;;  %v945_v44 = vpack.c.bf16 %v553_v37, %v552_v36 }
  0x3e   :  { %905 = vmatprep.subr.bf16.mxu0 %v1072_v38 }
  0x41   :  { %907 = vmatpush3.bf16.msra.mxu0 %v906_v47  ;;  %v555_v47 = vld [vmem:[%s1390_s7 + $0x18] sm:$0xff] }
  0x42   :  { %908 = vmatprep.subr.bf16.mxu0 %v1072_v38  ;;  %v948_v48 = vpack.c.bf16 %v555_v47, %v554_v46 }
  0x45   :  { %910 = vmatpush3.bf16.msra.mxu0 %v909_v50  ;;  %v557_v50 = vld [vmem:[%s1390_s7 + $0x28] sm:$0xff] }
  0x46   :  { %911 = vmatprep.subr.bf16.mxu0 %v1072_v38  ;;  %v951_v51 = vpack.c.bf16 %v557_v50, %v556_v49 }
  0x49   :  { %913 = vmatpush3.bf16.msra.mxu0 %v912_v53  ;;  %v559_v53 = vld [vmem:[%s1390_s7 + $0x38] sm:$0xff] }
  0x4a   :  { %914 = vmatprep.subr.bf16.mxu0 %v1072_v38  ;;  %v954_v54 = vpack.c.bf16 %v559_v53, %v558_v52 }
  0x4d   :  { %916 = vmatpush3.bf16.msra.mxu0 %v915_v56  ;;  %v561_v56 = vld [vmem:[%s1390_s7 + $0x48] sm:$0xff] }
  0x4e   :  { %917 = vmatprep.subr.bf16.mxu0 %v1072_v38  ;;  %v957_v57 = vpack.c.bf16 %v561_v56, %v560_v55 }
  0x51   :  { %919 = vmatpush3.bf16.msra.mxu0 %v918_v12 }
  0x52   :  { %944 = vmatprep.subr.bf16.mxu0 %v1072_v38 }
 0x107   :  { %v192_v0 = vpop.f32.mrb[0].mxu0 }
 0x108   :  { %v193_v1 = vadd.f32 %v192_v0, %v71_v62  ;;  %v194_v2 = vpop.f32.mrb[1].mxu0  ;;  %v565_v62 = vld [vmem:[%s1390_s7 + $0x68] sm:$0xff]  ;;  %v566_v0 = vld [vmem:[%s1390_s7 + $0x70] sm:$0xff] }
 0x109   :  { %v195_v3 = vadd.f32 %v194_v2, %v75_v63  ;;  %v196_v4 = vpop.f32.mrb[2].mxu0  ;;  %v963_v63 = vpack.c.bf16 %v565_v62, %v564_v61 }
 0x10a   :  { %v199_v5 = vmax.f32 %v193_v1, 0.0  ;;  %v197_v6 = vpop.f32.mrb[3].mxu0  ;;  %v567_v1 = vld [vmem:[%s1390_s7 + $0x78] sm:$0xff] }
 0x10b   :  { %v200_v7 = vmax.f32 %v195_v3, 0.0  ;;  %v966_v2 = vpack.c.bf16 %v567_v1, %v566_v0  ;;  %v480_v3 = vld [vmem:[%s1389_s6 + $0x70] sm:$0xff]  ;;  %v481_v4 = vld [vmem:[%s1389_s6 + $0x78] sm:$0xff]  ;;  %s1076_s6 = smov 124  }
 0x10c   :  { %v201_v9 = vpack.c.bf16 %v199_v5, %v199_v5  ;;  %v942_v5 = vpack.c.bf16 %v481_v4, %v480_v3 }
 0x10d   :  { %v202_v8 = vpack.c.bf16 %v200_v7, %v200_v7 }
 0x10f   :  { %370 = vmatprep.mubr.bf16.mxu1 %v202_v8 }
 0x110   :  { %371 = vmatmul.mubr.bf16.vlgmr.msra.gmra.mrb[0].mxu1 %v201_v9  ;;  %v717_v9 = vld [vmem:[%s1391_s8] ss:$0 sm:$0xff]  ;;  %s1077_s8 = smov [#allocation5]  }
 0x111   :  { %858 = vmatprep.mubr.msk.f32.mxu1 %vm1073_vm0, %v1074_v13  ;;  %922 = vmatpush3.bf16.msra.mxu1 %v921_v16  ;;  %s675_s13 = sshll.u32 %s1077_s8, 4  ;;  %s676_s13 = int_to_ptr.vmem [resolvable:$true] %s675_s13 }
 0x112   :  { %923 = vmatprep.subr.bf16.mxu1 %v1072_v38  ;;  %659 = vrot.lane.b32.xlu1 %v717_v9, %s1075_s12  ;;  %s1042_s14 = scalar_lea.vmem %s676_s13, 64  ;;  %p1047_p9 = scmp.lt.s32.totalorder %s676_s13, %s676_s13 }
 0x113   :  { %p1043_p8 = scmp.ne.s32.totalorder %s676_s13, %s1042_s14  ;;  %p1048_p10 = scmp.lt.s32.totalorder %s1042_s14, %s1042_s14 }
 0x115   :  { %925 = vmatpush3.bf16.msra.mxu1 %v924_v19  ;;  %p1049_p11 = por %p1048_p10, %p1047_p9 }
 0x116   :  { %926 = vmatprep.subr.bf16.mxu1 %v1072_v38 }
 0x117   :  { %p1050_p12 = pnand %p1049_p11, %p1043_p8 }
 0x119   :  { %928 = vmatpush3.bf16.msra.mxu1 %v927_v22 }
 0x11a   :  { %929 = vmatprep.subr.bf16.mxu1 %v1072_v38 }
 0x11d   :  { %931 = vmatpush3.bf16.msra.mxu1 %v930_v25 }
 0x11e   :  { %932 = vmatprep.subr.bf16.mxu1 %v1072_v38 }
 0x121   :  { %934 = vmatpush3.bf16.msra.mxu1 %v933_v28 }
 0x122   :  { %935 = vmatprep.subr.bf16.mxu1 %v1072_v38 }
 0x125   :  { %937 = vmatpush3.bf16.msra.mxu1 %v936_v31 }
 0x126   :  { %938 = vmatprep.subr.bf16.mxu1 %v1072_v38 }
 0x129   :  { %940 = vmatpush3.bf16.msra.mxu1 %v939_v34 }
 0x12a   :  { %941 = vmatprep.subr.bf16.mxu1 %v1072_v38 }
 0x12d   :  { %943 = vmatpush3.bf16.msra.mxu1 %v942_v5 }
 0x184   :  { %v660_v22 = vpop.permute.xlu1 %659 }
 0x1e3   :  { %v734_v35 = vpop.f32.mrb[0].mxu1 }
 0x1e4   :  { %v735_v40 = vpop.f32.mrb[1].mxu1 }
 0x1e5   :  { %v736_v41 = vadd.f32 %v735_v40, %v734_v35  ;;  %v737_v42 = vpop.f32.mrb[2].mxu1 }
 0x1e6   :  { %v738_v43 = vpop.f32.mrb[3].mxu1 }
 0x1e7   :  { %v373_v45 = vadd.f32 %v736_v41, %v700_v39 }
 0x1e9   :  { %824 = vmatmul.mubr.f32.vlgmr.msra.gmra.mrb[4].mxu0 %v373_v45 }
 0x1ea   :  { %946 = vmatpush3.bf16.msra.mxu0 %v945_v44  ;;  %893 = vmatprep.mubr.msk.f32.mxu0 %vm1073_vm0, %v1074_v13 }
 0x1eb   :  { %947 = vmatprep.subr.bf16.mxu0 %v1072_v38 }
 0x1ee   :  { %949 = vmatpush3.bf16.msra.mxu0 %v948_v48 }
 0x1ef   :  { %950 = vmatprep.subr.bf16.mxu0 %v1072_v38 }
 0x1f2   :  { %952 = vmatpush3.bf16.msra.mxu0 %v951_v51 }
 0x1f3   :  { %953 = vmatprep.subr.bf16.mxu0 %v1072_v38 }
 0x1f6   :  { %955 = vmatpush3.bf16.msra.mxu0 %v954_v54 }
 0x1f7   :  { %956 = vmatprep.subr.bf16.mxu0 %v1072_v38 }
 0x1fa   :  { %958 = vmatpush3.bf16.msra.mxu0 %v957_v57 }
 0x1fb   :  { %959 = vmatprep.subr.bf16.mxu0 %v1072_v38 }
 0x1fe   :  { %961 = vmatpush3.bf16.msra.mxu0 %v960_v60 }
 0x1ff   :  { %962 = vmatprep.subr.bf16.mxu0 %v1072_v38 }
 0x202   :  { %964 = vmatpush3.bf16.msra.mxu0 %v963_v63 }
 0x203   :  { %965 = vmatprep.subr.bf16.mxu0 %v1072_v38 }
 0x206   :  { %967 = vmatpush3.bf16.msra.mxu0 %v966_v2 }
 0x2bc   :  { %v460_v38 = vpop.f32.mrb[4].mxu0 }
 0x2bd   :  { %v464_v6 = vsub.f32 %v373_v45, %v460_v38  ;;  %v825_v7 = vpop.f32.mrb[5].mxu0 }
 0x2bf   :  { %v465_v8 = vmul.f32 %v464_v6, %v464_v6  ;;  %894 = vmatmul.mubr.f32.vlgmr.msra.gmra.mrb[6].mxu0 %v464_v6 }
 0x2c1   :  { %859 = vmatmul.mubr.f32.vlgmr.msra.gmra.mrb[4].mxu1 %v465_v8 }
 0x392   :  { %v634_v10 = vpop.f32.mrb[6].mxu0 }
 0x393   :  { %v895_v11 = vpop.f32.mrb[7].mxu0 }
 0x394   :  { %v548_v12 = vpop.f32.mrb[4].mxu1 }
 0x395   :  { %v638_v13 = vadd.f32 1e-05, %v548_v12  ;;  %v860_v14 = vpop.f32.mrb[5].mxu1 }
 0x397   :  { %1018 = vrsqrt.f32 %v638_v13 }
 0x3a1   :  { %v1019_v15 = vpop.eup %1018 }
 0x3a2   :  { %v640_v16 = vmul.f32 %v1019_v15, %v1019_v15  ;;  %v646_v17 = vmul.f32 %v1019_v15, %v634_v10 }
 0x3a4   :  { %642 = vrot.lane.b32.xlu0 %v640_v16, %s1075_s12  ;;  %v647_v18 = vmul.f32 2.0, %v646_v17 }
 0x3a8   :  { %649 = vrot.lane.b32.xlu0 %v647_v18, %s1075_s12 }
 0x416   :  { %v643_v19 = vpop.permute.xlu0 %642 }
 0x417   :  { %v645_v20 = vmul.f32 %v643_v19, %v548_v12 }
 0x41a   :  { %v650_v21 = vpop.permute.xlu0 %649 }
 0x41b   :  { %v652_v23 = vadd.f32 %v650_v21, %v645_v20 }
 0x41d   :  { %v662_v24 = vadd.f32 %v660_v22, %v652_v23 }
 0x41f   :  { %664 = vrot.lane.b32.xlu1 %v662_v24, %s1076_s6 }
 0x491   :  { %v665_v25 = vpop.permute.xlu1 %664 }
 0x492   :  { %668 = vst.msk [vmem:[#allocation5] sm:$0xf] %vm667_vm1, %v665_v25 }
 0x493   :  { %1053 = shalt.err (!%p1050_p12)
}
 0x494   :  { %s1054_s0 = scalar_lea.hbm %s1392_s9, 64 }
 0x495   :  { %p1055_p13 = scmp.ne.s32.totalorder %s1392_s9, %s1054_s0  ;;  %p1058_p0 = scmp.lt.u32.totalorder %s1054_s0, %s1392_s9 }
 0x497   :  { %p1060_p1 = pnand %p1058_p0, %p1055_p13 }
 0x499   :  { %1063 = shalt.err (!%p1060_p1)
}
 0x49a   :  { %678 = dma.vmem_to_hbm [thread:$0]  %s676_s13, 64, %s1392_s9, [#allocation4]  }
 0x49b   :  { %1066 = dma.done.wait [#allocation4], 64  }
 0x49c   :  { %1067 = vsyncadd [#allocation4], 4294967232 }
 0x49d   :  { %682 = vsyncpa [#allocation3], 1 }
 0x49e   :  { %683 = vsyncpa [#allocation4], 1 }

</bundles_post_ra>
